<compile_context>
chip_gen: v5e
topology: v5e:2x2
jax: 0.10.0
libtpu: 0.0.40
codegen_flags: <defaults>
</compile_context>

<pallas_src>
import functools

import jax
import jax.numpy as jnp
from jax import lax
from jax.experimental import pallas as pl
from jax.experimental.pallas import tpu as pltpu


# ------------------------------ helpers ---------------------------------------

def _vmem_limit(need_bytes):
    """VMEM request sized from the real footprint; never clamps need downward."""
    cap = 64 << 20  # conservative default (v7x per-TC capacity)
    try:
        info = pltpu.get_tpu_info()
        cap = int(getattr(info, "vmem_capacity_bytes", cap))
    except Exception:
        pass
    limit = max(int(need_bytes) + (8 << 20), 32 << 20)
    return int(min(limit, int(cap * 0.9)))


def _fold_lane_dense(total):
    """Factor `total` into (rows, lanes, padded_total) with lanes a multiple of
    128.  If no 128-divisible factorization exists, pad up to a multiple of
    8*128 so stores stay unmasked (lane-dense)."""
    for lanes in (1024, 512, 256, 128):
        if total % lanes == 0 and total // lanes >= 8:
            return total // lanes, lanes, total
    for lanes in (1024, 512, 256, 128):
        if total % lanes == 0:
            return total // lanes, lanes, total
    padded = pl.cdiv(total, 8 * 128) * (8 * 128)
    return padded // 128, 128, padded


# ------------------------------ kernels ---------------------------------------

def _add_kernel(y1_ref, y2_ref, o_ref):
    o_ref[...] = ((y1_ref[...] + y2_ref[...]) * 0.5).astype(o_ref.dtype)


def _l1_weight_kernel(y1_ref, y2_ref, w_ref, bh_ref, bw_ref, *, window_width):
    """Per-image fusion weight map w1 = A1 / (A1 + A2), shape (H, W), f32."""
    C, H, W = y1_ref.shape

    # Band ("box") matrices generated ONCE into persistent VMEM scratch:
    #   bw: (W, W)    band of half-width `window_width` (column filter)
    #   bh: (2H, 2H)  block-diagonal band -> one matmul applies the row
    #                 filter to the stacked [a1; a2] activity map.
    @pl.when(pl.program_id(0) == 0)
    def _():
        i = lax.broadcasted_iota(jnp.int32, (2 * H, 2 * H), 0)
        j = lax.broadcasted_iota(jnp.int32, (2 * H, 2 * H), 1)
        bh_ref[...] = ((jnp.abs(i - j) <= window_width)
                       & ((i < H) == (j < H))).astype(jnp.float32)
        iw = lax.broadcasted_iota(jnp.int32, (W, W), 0)
        jw = lax.broadcasted_iota(jnp.int32, (W, W), 1)
        bw_ref[...] = (jnp.abs(iw - jw) <= window_width).astype(jnp.float32)

    # Channel-summed absolute activity (the all-ones conv kernel sums over C,
    # so every output channel of the conv is identical).  f32 accumulation.
    a1 = jnp.sum(jnp.abs(y1_ref[...]).astype(jnp.float32), axis=0)  # (H, W)
    a2 = jnp.sum(jnp.abs(y2_ref[...]).astype(jnp.float32), axis=0)  # (H, W)

    # Zero-padded box filter == banded matmul on both sides.  A1/A2 fused into
    # TWO matmuls via row-stacking + block-diagonal band.  The 1/k^2 scale
    # cancels in A1/(A1+A2) and is dropped.  HIGHEST precision keeps the f32
    # box sums at parity with the conv reference.
    stacked = jnp.concatenate([a1, a2], axis=0)                      # (2H, W)
    t = jnp.dot(stacked, bw_ref[...],
                preferred_element_type=jnp.float32,
                precision=lax.Precision.HIGHEST)                     # (2H, W)
    A = jnp.dot(bh_ref[...], t,
                preferred_element_type=jnp.float32,
                precision=lax.Precision.HIGHEST)                     # (2H, W)
    A1 = A[:H]
    A2 = A[H:]

    # Exact division (the approx reciprocal caused the previous mismatch).
    w_ref[...] = A1 / (A1 + A2)


def _l1_blend_kernel(y1_ref, y2_ref, w_ref, o_ref):
    """Lane-dense blend: out = y2 + w1 * (y1 - y2)  (== W1*y1 + W2*y2)."""
    w1 = w_ref[...]                                   # (1, hw_tile) f32
    y1 = y1_ref[...]                                  # (C, hw_tile)
    y2 = y2_ref[...]
    o_ref[...] = (y2 + w1 * (y1 - y2)).astype(o_ref.dtype)


# ------------------------------ wrapper ----------------------------------------

def strategy_forward(y1, y2, mode="add", window_width=1):
    assert y1.shape == y2.shape and y1.dtype == y2.dtype

    if mode == "add":
        shape = y1.shape
        total = 1
        for s in shape:
            total *= int(s)
        rows, lanes, padded = _fold_lane_dense(total)
        itemsize = y1.dtype.itemsize

        def flat(x):
            x = x.reshape(-1)
            if padded != total:
                x = jnp.pad(x, (0, padded - total))
            return x.reshape(rows, lanes)

        y1f, y2f = flat(y1), flat(y2)

        # Large blocks (pure mem-bound); cap the double-buffered footprint of
        # the three streams at ~24 MiB so it is comfortable on v7x (64 MiB)
        # while still using 1024-row blocks on the 128 MiB parts.
        br_cap = (24 << 20) // (6 * lanes * itemsize)
        br = min(rows, max(8, (br_cap // 8) * 8), 2048)
        need = 6 * br * lanes * itemsize
        spec = pl.BlockSpec((br, lanes), lambda i: (i, 0))

        out = pl.pallas_call(
            _add_kernel,
            out_shape=jax.ShapeDtypeStruct((rows, lanes), y1.dtype),
            grid=(pl.cdiv(rows, br),),
            in_specs=[spec, spec],
            out_specs=spec,
            compiler_params=pltpu.CompilerParams(
                dimension_semantics=("parallel",),
                vmem_limit_bytes=_vmem_limit(need)),
        )(y1f, y2f)
        out = out.reshape(-1)
        if padded != total:
            out = out[:total]
        return out.reshape(shape)

    if mode == "l1":
        N, C, H, W = y1.shape
        HW = H * W
        itemsize = y1.dtype.itemsize

        # ---- pass 1: per-image weight map w1 = A1 / (A1 + A2) --------------
        # TODO(synk): for very large C*H*W also tile the channel sum over C
        # (reduction grid axis) so one block fits v7x's 64 MiB VMEM.
        img_blk = pl.BlockSpec((pl.Squeezed(), C, H, W), lambda n: (n, 0, 0, 0))
        wout_blk = pl.BlockSpec((pl.Squeezed(), H, W), lambda n: (n, 0, 0))
        need1 = (4 * C * H * W * itemsize           # y1, y2 double-buffered
                 + 2 * H * W * 4                    # w1 double-buffered
                 + (4 * H * H + W * W) * 4          # band scratch
                 + 8 * H * W * 4)                   # in-kernel temporaries
        w1 = pl.pallas_call(
            functools.partial(_l1_weight_kernel, window_width=window_width),
            out_shape=jax.ShapeDtypeStruct((N, H, W), jnp.float32),
            grid=(N,),
            in_specs=[img_blk, img_blk],
            out_specs=wout_blk,
            scratch_shapes=[pltpu.VMEM((2 * H, 2 * H), jnp.float32),
                            pltpu.VMEM((W, W), jnp.float32)],
            compiler_params=pltpu.CompilerParams(
                # "arbitrary": the band scratch is filled once at step 0 and
                # reused; a megacore-parallel split would skip that init.
                dimension_semantics=("arbitrary",),
                vmem_limit_bytes=_vmem_limit(need1)),
        )(y1, y2)

        # ---- pass 2: lane-dense blend over (N, C, H*W) ----------------------
        hwt = HW if HW <= 32768 else 32768          # 32768 % 128 == 0
        n_hw = pl.cdiv(HW, hwt)
        y_blk = pl.BlockSpec((pl.Squeezed(), C, hwt), lambda n, t: (n, 0, t))
        w_blk = pl.BlockSpec((pl.Squeezed(), 1, hwt), lambda n, t: (n, 0, t))
        need2 = 6 * C * hwt * itemsize + 2 * hwt * 4
        out = pl.pallas_call(
            _l1_blend_kernel,
            out_shape=jax.ShapeDtypeStruct((N, C, HW), y1.dtype),
            grid=(N, n_hw),
            in_specs=[y_blk, y_blk, w_blk],
            out_specs=y_blk,
            compiler_params=pltpu.CompilerParams(
                dimension_semantics=("parallel", "parallel"),
                vmem_limit_bytes=_vmem_limit(need2)),
        )(y1.reshape(N, C, HW), y2.reshape(N, C, HW), w1.reshape(N, 1, HW))
        return out.reshape(N, C, H, W)

    raise ValueError(f"unknown mode {mode!r}")


# --------------------------- pure-JAX reference --------------------------------

def strategy_ref(y1, y2, mode="add", window_width=1):
    if mode == "add":
        return (y1 + y2) / 2
    C = y1.shape[1]
    k = 2 * window_width + 1
    kernel = jnp.ones((C, C, k, k), jnp.float32) / float(k * k)
    conv = lambda x: lax.conv_general_dilated(
        jnp.abs(x), kernel, window_strides=(1, 1),
        padding=[(window_width, window_width)] * 2,
        dimension_numbers=("NCHW", "OIHW", "NCHW"),
        precision=lax.Precision.HIGHEST)
    A1, A2 = conv(y1), conv(y2)
    W1 = A1 / (A1 + A2)
    W2 = A2 / (A1 + A2)
    return W1 * y1 + W2 * y2


# --------------------------------- main -----------------------------------------

if __name__ == "__main__":
    key = jax.random.PRNGKey(0)
    k1, k2 = jax.random.split(key)
    N, C, H, W = 2, 4, 16, 16
    y1 = jax.random.normal(k1, (N, C, H, W), jnp.float32)
    y2 = jax.random.normal(k2, (N, C, H, W), jnp.float32)

    # mode='add'
    out_add = jax.block_until_ready(strategy_forward(y1, y2, mode="add"))
    ref_add = strategy_ref(y1, y2, mode="add")
    assert jnp.allclose(out_add, ref_add, atol=1e-6), "add mode mismatch"

    # mode='l1' (exact division + HIGHEST-precision box matmuls)
    out_l1 = jax.block_until_ready(
        strategy_forward(y1, y2, mode="l1", window_width=1))
    ref_l1 = strategy_ref(y1, y2, mode="l1", window_width=1)
    assert jnp.allclose(out_l1, ref_l1, atol=2e-3, rtol=2e-3), "l1 mode mismatch"

    print("KERNEL_OK")
</pallas_src>

<mosaic_0001>
module attributes {stable_mosaic.version = 11 : i64} {
  func.func @_add_kernel(%arg0: i32, %arg1: memref<8x256xf32, #tpu.memory_space<vmem>>, %arg2: memref<8x256xf32, #tpu.memory_space<vmem>>, %arg3: memref<8x256xf32, #tpu.memory_space<vmem>>) attributes {dimension_semantics = [#tpu.dimension_semantics<parallel>], iteration_bounds = array<i64: 1>, scalar_prefetch = 0 : i64, scratch_operands = 0 : i64, tpu.core_type = #tpu.core_type<tc>, window_params = [{transform_indices = @transform_0, window_bounds = array<i64: 8, 256>}, {transform_indices = @transform_1, window_bounds = array<i64: 8, 256>}, {transform_indices = @transform_2, window_bounds = array<i64: 8, 256>}]} {
    %c0 = arith.constant 0 : index
    %c0_0 = arith.constant 0 : index
    %0 = vector.load %arg1[%c0, %c0_0] : memref<8x256xf32, #tpu.memory_space<vmem>>, vector<8x256xf32>
    %c0_1 = arith.constant 0 : index
    %c0_2 = arith.constant 0 : index
    %1 = vector.load %arg2[%c0_1, %c0_2] : memref<8x256xf32, #tpu.memory_space<vmem>>, vector<8x256xf32>
    %2 = arith.addf %0, %1 : vector<8x256xf32>
    %cst = arith.constant 5.000000e-01 : f32
    %3 = vector.broadcast %cst : f32 to vector<8x256xf32>
    %4 = arith.mulf %2, %3 : vector<8x256xf32>
    %c0_3 = arith.constant 0 : index
    %c0_4 = arith.constant 0 : index
    %5 = vector.load %arg3[%c0_3, %c0_4] : memref<8x256xf32, #tpu.memory_space<vmem>>, vector<8x256xf32>
    tpu.vector_store %arg3[%c0_3, %c0_4], %4 {strides = array<i32>} : memref<8x256xf32, #tpu.memory_space<vmem>>, vector<8x256xf32>,
    return
  }
  func.func @transform_0(%arg0: i32) -> (i32, i32) {
    %c0_i32 = arith.constant 0 : i32
    %c0_i32_0 = arith.constant 0 : i32
    return %arg0, %c0_i32 : i32, i32
  }
  func.func @transform_1(%arg0: i32) -> (i32, i32) {
    %c0_i32 = arith.constant 0 : i32
    %c0_i32_0 = arith.constant 0 : i32
    return %arg0, %c0_i32 : i32, i32
  }
  func.func @transform_2(%arg0: i32) -> (i32, i32) {
    %c0_i32 = arith.constant 0 : i32
    %c0_i32_0 = arith.constant 0 : i32
    return %arg0, %c0_i32 : i32, i32
  }
}

</mosaic_0001>

<bundles_post_ra>
// kernel: tpu_custom_call.1
= control target key start
LH: loop header
LB: loop body
LE: loop exit
PB: predicated region body
PF: predicated region fallthrough
CT: control target
= control target key end

     0   :  { %7 = vsyncpa [#allocation3], 0  ;;  %s176_s0 = inlined_call_operand.hbm [shape: f32[8,256], index: 0, kind: input, shape index: {}]   ;;  %s177_s1 = inlined_call_operand.hbm [shape: f32[8,256], index: 1, kind: input, shape index: {}]   ;;  %s178_s2 = inlined_call_operand.hbm [shape: f32[8,256], index: 2, kind: output, shape index: {}]  }
   0x1   :  { %8 = vsyncpa [#allocation6], 0 }
   0x2   :  { %9 = vsyncpa [#allocation4], 0  ;;  %s15_s11 = sshll.u32 %s176_s0, 4  ;;  %s149_s12 = smov [#allocation2]   ;;  %s16_s11 = int_to_ptr.hbm [resolvable:$true] %s15_s11 }
   0x3   :  { %s17_s13 = sshll.u32 %s149_s12, 4  ;;  %s26_s16 = sshll.u32 %s177_s1, 4  ;;  %s18_s13 = int_to_ptr.vmem [resolvable:$true] %s17_s13  ;;  %s27_s16 = int_to_ptr.hbm [resolvable:$true] %s26_s16 }
   0x4   :  { %20 = dma.hbm_to_vmem [thread:$0]  %s16_s11, 256, %s18_s13, [#allocation3]  }
   0x5   :  { %s150_s17 = smov [#allocation5]  }
   0x6   :  { %s28_s18 = sshll.u32 %s150_s17, 4  ;;  %s29_s18 = int_to_ptr.vmem [resolvable:$true] %s28_s18 }
   0x7   :  { %31 = dma.hbm_to_vmem [thread:$0]  %s27_s16, 256, %s29_s18, [#allocation6]  }
   0x8   :  { %143 = dma.done.wait [#allocation3], 256  }
   0x9   :  { %144 = vsyncadd [#allocation3], 4294967040 }
   0xa   :  { %145 = dma.done.wait [#allocation6], 256  }
   0xb   :  { %146 = vsyncadd [#allocation6], 4294967040  ;;  %v40_v0 = vld [vmem:[#allocation2] sm:$0xff]  ;;  %v42_v1 = vld [vmem:[#allocation5] sm:$0xff]  ;;  %s151_s0 = smov [#allocation7]   ;;  %s57_s1 = sshll.u32 %s178_s2, 4  ;;  %s58_s1 = int_to_ptr.hbm [resolvable:$true] %s57_s1 }
   0xc   :  { %v41_v2 = vld [vmem:[#allocation2 + $0x8] sm:$0xff]  ;;  %v44_v3 = vadd.f32 %v42_v1, %v40_v0  ;;  %v43_v4 = vld [vmem:[#allocation5 + $0x8] sm:$0xff]  ;;  %s55_s19 = sshll.u32 %s151_s0, 4  ;;  %s56_s19 = int_to_ptr.vmem [resolvable:$true] %s55_s19 }
   0xd   :  { %v45_v5 = vadd.f32 %v43_v4, %v41_v2 }
   0xe   :  { %v46_v6 = vmul.f32 0.5, %v44_v3 }
   0xf   :  { %v47_v7 = vmul.f32 0.5, %v45_v5 }
  0x10   :  { %48 = vst [vmem:[#allocation7] sm:$0xff] %v46_v6 }
  0x11   :  { %49 = vst [vmem:[#allocation7 + $0x8] sm:$0xff] %v47_v7 }
  0x12   :  { %60 = dma.vmem_to_hbm [thread:$0]  %s56_s19, 256, %s58_s1, [#allocation4]  }
  0x13   :  { %147 = dma.done.wait [#allocation4], 256  }
  0x14   :  { %148 = vsyncadd [#allocation4], 4294967040 }
  0x15   :  { %65 = vsyncpa [#allocation3], 1 }
  0x16   :  { %66 = vsyncpa [#allocation6], 1 }
  0x17   :  { %67 = vsyncpa [#allocation4], 1 }

</bundles_post_ra>
